<compile_context>
chip_gen: v6e
topology: v6e:2x2x1
jax: 0.10.0
libtpu: 0.0.40
codegen_flags: <defaults>
</compile_context>

<pallas_src>
import functools

import jax
import jax.numpy as jnp
from jax.experimental import pallas as pl
from jax.experimental.pallas import tpu as pltpu


def _contrastive_kernel(o1_ref, o2_ref, lbl_ref, out_ref, acc_ref, *,
                        margin, total_b, tile_b, nt, need_mask):
    c = pl.program_id(0)          # core-split index ("parallel" axis)
    i = pl.program_id(1)          # batch tile within this split ("arbitrary")

    @pl.when(i == 0)
    def _():
        acc_ref[...] = jnp.zeros_like(acc_ref)

    eps = 1e-6  # F.pairwise_distance default eps (added to the diff)
    diff = o1_ref[...].astype(jnp.float32) - o2_ref[...].astype(jnp.float32) + eps

    sumsq = jnp.sum(diff * diff, axis=1, keepdims=True)     # (tb, 1) == dist**2
    dist = jnp.sqrt(sumsq)                                   # euclidean distance

    lbl = lbl_ref[...].astype(jnp.float32)                   # (tb, 1)
    pos = (1.0 - lbl) * sumsq                                # reuse sumsq == dist**2
    neg = lbl * jnp.square(jnp.maximum(margin - dist, 0.0))
    contrib = pos + neg

    if need_mask:
        # Only emitted when the grid over-covers B: mask rows of the partial
        # edge block (garbage stays row-isolated; the select zeroes it out).
        local_row = jax.lax.broadcasted_iota(jnp.int32, contrib.shape, 0)
        global_row = (c * nt + i) * tile_b + local_row
        contrib = jnp.where(global_row < total_b, contrib, 0.0)

    acc_ref[...] += jnp.sum(contrib, keepdims=True)          # (1, 1) partial SUM

    @pl.when(i == nt - 1)
    def _():
        out_ref[...] = acc_ref[...]


def _vmem_capacity_bytes():
    try:
        return int(pltpu.get_tpu_info().vmem_capacity_bytes)
    except Exception:
        return 64 * 1024 * 1024   # conservative: v7x per-TC physical VMEM


def _num_core_splits():
    # 2-way split only on chips with 2 TensorCores per chip (v7x-like).
    # v5e/v6e have a single TC, so splitting only adds grid-step overhead.
    try:
        kind = jax.devices()[0].device_kind.lower()
    except Exception:
        return 1
    return 2 if ("v7" in kind or "7x" in kind) else 1


def _pick_tile_b(B, D, itemsize, align, num_splits, block_budget_bytes):
    """Batch-tile size: 2 streamed inputs x 2 pipeline buffers fit the budget."""
    tb = block_budget_bytes // (4 * D * itemsize)
    tb = max(align, (tb // align) * align)
    tb = min(tb, 8192)
    # Don't over-cover small / split batches (tiny-batch fast path).
    per_split = -(-B // num_splits)
    per_split = -(-per_split // align) * align
    return int(max(align, min(tb, per_split)))


def contrastive_loss(output1, output2, label, margin=2.0):
    """Pallas implementation of ContrastiveLoss.forward (returns a scalar)."""
    B, D = output1.shape
    label = jnp.asarray(label).reshape(B, 1).astype(jnp.float32)

    itemsize = max(jnp.dtype(output1.dtype).itemsize,
                   jnp.dtype(output2.dtype).itemsize)
    align = 8 * (4 // itemsize)      # 8 (f32) / 16 (bf16) / 32 (int8/fp8) sublanes

    vmem_cap = _vmem_capacity_bytes()
    vmem_limit = min(vmem_cap // 2, 64 * 1024 * 1024)   # 32 MiB on v7x, 64 MiB else
    block_budget = vmem_limit // 2                      # for the two streamed inputs

    num_splits = _num_core_splits()

    def plan(ns):
        tb_ = _pick_tile_b(B, D, itemsize, align, ns, block_budget)
        return tb_, int(pl.cdiv(B, ns * tb_))

    tb, nt = plan(num_splits)
    if num_splits > 1 and (num_splits * nt - 1) * tb >= B:
        # The split would create a fully out-of-bounds block; fall back to one.
        num_splits = 1
        tb, nt = plan(1)

    need_mask = (num_splits * nt * tb) != B

    kernel = functools.partial(
        _contrastive_kernel, margin=float(margin), total_b=B, tile_b=tb,
        nt=nt, need_mask=need_mask)

    cost = pl.CostEstimate(
        flops=int(3 * B * D + 8 * B),
        transcendentals=int(B),
        bytes_accessed=int(2 * B * D * itemsize + 4 * B + 4 * num_splits),
    )

    partials = pl.pallas_call(
        kernel,
        out_shape=jax.ShapeDtypeStruct((num_splits, 1, 1), jnp.float32),
        grid=(num_splits, nt),
        in_specs=[
            pl.BlockSpec((tb, D), lambda c, i, nt=nt: (c * nt + i, 0)),
            pl.BlockSpec((tb, D), lambda c, i, nt=nt: (c * nt + i, 0)),
            pl.BlockSpec((tb, 1), lambda c, i, nt=nt: (c * nt + i, 0)),
        ],
        out_specs=pl.BlockSpec((None, 1, 1), lambda c, i: (c, 0, 0)),
        scratch_shapes=[pltpu.VMEM((1, 1), jnp.float32)],
        compiler_params=pltpu.CompilerParams(
            dimension_semantics=("parallel", "arbitrary"),
            vmem_limit_bytes=int(vmem_limit),
        ),
        cost_estimate=cost,
    )(output1, output2, label)

    return jnp.sum(partials) / B


def _reference_loss(output1, output2, label, margin=2.0):
    # Pure-JAX reference of the PyTorch semantics, for sanity checking.
    eps = 1e-6
    d = jnp.sqrt(jnp.sum((output1 - output2 + eps) ** 2, axis=-1, keepdims=True))
    lbl = jnp.asarray(label).reshape(-1, 1)
    return jnp.mean((1.0 - lbl) * d ** 2
                    + lbl * jnp.maximum(margin - d, 0.0) ** 2)


if __name__ == "__main__":
    key = jax.random.PRNGKey(0)
    k1, k2, k3, k4, k5, k6 = jax.random.split(key, 6)

    # Case 1: small, tile-aligned batch -> single grid step, no mask, no pad.
    B, D = 8, 32
    output1 = jax.random.normal(k1, (B, D), dtype=jnp.float32)
    output2 = jax.random.normal(k2, (B, D), dtype=jnp.float32)
    label = jax.random.bernoulli(k3, p=0.5, shape=(B, 1)).astype(jnp.float32)

    loss = contrastive_loss(output1, output2, label, margin=2.0)
    jax.block_until_ready(loss)
    ref = _reference_loss(output1, output2, label, margin=2.0)
    assert jnp.allclose(loss, ref, rtol=1e-5, atol=1e-5), (loss, ref)

    # Case 2: ragged batch with D < 128 -> boundary-block mask path, no padding.
    B2, D2 = 37, 96
    o1b = jax.random.normal(k4, (B2, D2), dtype=jnp.float32)
    o2b = jax.random.normal(k5, (B2, D2), dtype=jnp.float32)
    lblb = jax.random.bernoulli(k6, p=0.5, shape=(B2,)).astype(jnp.float32)

    loss2 = contrastive_loss(o1b, o2b, lblb, margin=2.0)
    jax.block_until_ready(loss2)
    ref2 = _reference_loss(o1b, o2b, lblb, margin=2.0)
    assert jnp.allclose(loss2, ref2, rtol=1e-5, atol=1e-5), (loss2, ref2)

    print("KERNEL_OK")
</pallas_src>

<mosaic_0001>
module attributes {stable_mosaic.version = 11 : i64} {
  func.func @_contrastive_kernel(%arg0: i32, %arg1: i32, %arg2: memref<8x32xf32, #tpu.memory_space<vmem>>, %arg3: memref<8x32xf32, #tpu.memory_space<vmem>>, %arg4: memref<8x1xf32, #tpu.memory_space<vmem>>, %arg5: memref<1x1x1xf32, #tpu.memory_space<vmem>>, %arg6: memref<1x1xf32, #tpu.memory_space<vmem>>) attributes {dimension_semantics = [#tpu.dimension_semantics<parallel>, #tpu.dimension_semantics<arbitrary>], iteration_bounds = array<i64: 1, 1>, scalar_prefetch = 0 : i64, scratch_operands = 1 : i64, tpu.core_type = #tpu.core_type<tc>, window_params = [{transform_indices = @transform_0, window_bounds = array<i64: 8, 32>}, {transform_indices = @transform_1, window_bounds = array<i64: 8, 32>}, {transform_indices = @transform_2, window_bounds = array<i64: 8, 1>}, {transform_indices = @transform_3, window_bounds = array<i64: 1, 1, 1>}]} {
    %c0_i32 = arith.constant 0 : i32
    %0 = arith.cmpi eq, %arg1, %c0_i32 : i32
    %1 = arith.extui %0 : i1 to i32
    %c0_i32_0 = arith.constant 0 : i32
    %2 = arith.cmpi ne, %1, %c0_i32_0 : i32
    scf.if %2 {
      %cst_17 = arith.constant 0.000000e+00 : f32
      %34 = vector.broadcast %cst_17 : f32 to vector<1x1xf32>
      %c0_18 = arith.constant 0 : index
      %c0_19 = arith.constant 0 : index
      %35 = vector.load %arg6[%c0_18, %c0_19] : memref<1x1xf32, #tpu.memory_space<vmem>>, vector<1x1xf32>
      tpu.vector_store %arg6[%c0_18, %c0_19], %34 {strides = array<i32>} : memref<1x1xf32, #tpu.memory_space<vmem>>, vector<1x1xf32>,
    } else {
    }
    %c0 = arith.constant 0 : index
    %c0_1 = arith.constant 0 : index
    %3 = vector.load %arg2[%c0, %c0_1] : memref<8x32xf32, #tpu.memory_space<vmem>>, vector<8x32xf32>
    %c0_2 = arith.constant 0 : index
    %c0_3 = arith.constant 0 : index
    %4 = vector.load %arg3[%c0_2, %c0_3] : memref<8x32xf32, #tpu.memory_space<vmem>>, vector<8x32xf32>
    %5 = arith.subf %3, %4 : vector<8x32xf32>
    %cst = arith.constant 9.99999997E-7 : f32
    %6 = vector.broadcast %cst : f32 to vector<8x32xf32>
    %7 = arith.addf %5, %6 : vector<8x32xf32>
    %8 = arith.mulf %7, %7 : vector<8x32xf32>
    %cst_4 = arith.constant dense<0.000000e+00> : vector<8xf32>
    %9 = vector.multi_reduction <add>, %8, %cst_4 [1] : vector<8x32xf32> to vector<8xf32>
    %10 = vector.shape_cast %9 : vector<8xf32> to vector<8x1xf32>
    %11 = math.sqrt %10 : vector<8x1xf32>
    %c0_5 = arith.constant 0 : index
    %c0_6 = arith.constant 0 : index
    %12 = vector.load %arg4[%c0_5, %c0_6] : memref<8x1xf32, #tpu.memory_space<vmem>>, vector<8x1xf32>
    %cst_7 = arith.constant 1.000000e+00 : f32
    %13 = vector.broadcast %cst_7 : f32 to vector<8x1xf32>
    %14 = arith.subf %13, %12 : vector<8x1xf32>
    %15 = arith.mulf %14, %10 : vector<8x1xf32>
    %cst_8 = arith.constant 2.000000e+00 : f32
    %16 = vector.broadcast %cst_8 : f32 to vector<8x1xf32>
    %17 = arith.subf %16, %11 : vector<8x1xf32>
    %cst_9 = arith.constant 0.000000e+00 : f32
    %18 = vector.broadcast %cst_9 : f32 to vector<8x1xf32>
    %19 = arith.maximumf %17, %18 : vector<8x1xf32>
    %20 = arith.mulf %19, %19 : vector<8x1xf32>
    %21 = arith.mulf %12, %20 : vector<8x1xf32>
    %22 = arith.addf %15, %21 : vector<8x1xf32>
    %c0_10 = arith.constant 0 : index
    %c0_11 = arith.constant 0 : index
    %23 = vector.load %arg6[%c0_10, %c0_11] : memref<1x1xf32, #tpu.memory_space<vmem>>, vector<1x1xf32>
    %24 = vector.shape_cast %22 : vector<8x1xf32> to vector<1x8x1xf32>
    %cst_12 = arith.constant dense<0.000000e+00> : vector<1xf32>
    %25 = vector.multi_reduction <add>, %24, %cst_12 [1, 2] : vector<1x8x1xf32> to vector<1xf32>
    %26 = vector.shape_cast %25 : vector<1xf32> to vector<1x1x1xf32>
    %27 = vector.extract %26[0, 0, 0] : f32 from vector<1x1x1xf32>
    %28 = vector.broadcast %27 : f32 to vector<1x1xf32>
    %29 = arith.addf %23, %28 : vector<1x1xf32>
    %c0_13 = arith.constant 0 : index
    %c0_14 = arith.constant 0 : index
    %30 = vector.load %arg6[%c0_13, %c0_14] : memref<1x1xf32, #tpu.memory_space<vmem>>, vector<1x1xf32>
    tpu.vector_store %arg6[%c0_13, %c0_14], %29 {strides = array<i32>} : memref<1x1xf32, #tpu.memory_space<vmem>>, vector<1x1xf32>,
    %c0_i32_15 = arith.constant 0 : i32
    %31 = arith.cmpi eq, %arg1, %c0_i32_15 : i32
    %32 = arith.extui %31 : i1 to i32
    %c0_i32_16 = arith.constant 0 : i32
    %33 = arith.cmpi ne, %32, %c0_i32_16 : i32
    scf.if %33 {
      %c0_17 = arith.constant 0 : index
      %c0_18 = arith.constant 0 : index
      %34 = vector.load %arg6[%c0_17, %c0_18] : memref<1x1xf32, #tpu.memory_space<vmem>>, vector<1x1xf32>
      %c0_19 = arith.constant 0 : index
      %c0_20 = arith.constant 0 : index
      %c0_21 = arith.constant 0 : index
      %35 = vector.load %arg5[%c0_19, %c0_20, %c0_21] : memref<1x1x1xf32, #tpu.memory_space<vmem>>, vector<1x1x1xf32>
      %36 = vector.shape_cast %35 : vector<1x1x1xf32> to vector<1x1xf32>
      %37 = vector.shape_cast %34 : vector<1x1xf32> to vector<1x1x1xf32>
      tpu.vector_store %arg5[%c0_19, %c0_20, %c0_21], %37 {strides = array<i32>} : memref<1x1x1xf32, #tpu.memory_space<vmem>>, vector<1x1x1xf32>,
    } else {
    }
    return
  }
  func.func @transform_0(%arg0: i32, %arg1: i32) -> (i32, i32) {
    %c1_i32 = arith.constant 1 : i32
    %0 = arith.muli %arg0, %c1_i32 : i32
    %1 = arith.addi %0, %arg1 : i32
    %c0_i32 = arith.constant 0 : i32
    %c0_i32_0 = arith.constant 0 : i32
    return %1, %c0_i32 : i32, i32
  }
  func.func @transform_1(%arg0: i32, %arg1: i32) -> (i32, i32) {
    %c1_i32 = arith.constant 1 : i32
    %0 = arith.muli %arg0, %c1_i32 : i32
    %1 = arith.addi %0, %arg1 : i32
    %c0_i32 = arith.constant 0 : i32
    %c0_i32_0 = arith.constant 0 : i32
    return %1, %c0_i32 : i32, i32
  }
  func.func @transform_2(%arg0: i32, %arg1: i32) -> (i32, i32) {
    %c1_i32 = arith.constant 1 : i32
    %0 = arith.muli %arg0, %c1_i32 : i32
    %1 = arith.addi %0, %arg1 : i32
    %c0_i32 = arith.constant 0 : i32
    %c0_i32_0 = arith.constant 0 : i32
    return %1, %c0_i32 : i32, i32
  }
  func.func @transform_3(%arg0: i32, %arg1: i32) -> (i32, i32, i32) {
    %c0_i32 = arith.constant 0 : i32
    %c0_i32_0 = arith.constant 0 : i32
    %c0_i32_1 = arith.constant 0 : i32
    return %arg0, %c0_i32, %c0_i32_0 : i32, i32, i32
  }
}

</mosaic_0001>

<bundles_post_ra>
// kernel: tpu_custom_call.1
= control target key start
LH: loop header
LB: loop body
LE: loop exit
PB: predicated region body
PF: predicated region fallthrough
CT: control target
= control target key end

     0   :  { %8 = vsyncpa [#allocation4], 0  ;;  %s232_s0 = inlined_call_operand.vmem [shape: f32[8,32], index: 0, kind: input, shape index: {}]   ;;  %s233_s1 = inlined_call_operand.hbm [shape: f32[8,32], index: 1, kind: input, shape index: {}]   ;;  %s234_s2 = inlined_call_operand.vmem [shape: f32[8,1], index: 2, kind: input, shape index: {}]   ;;  %s235_s3 = inlined_call_operand.hbm [shape: f32[1,1,1], index: 3, kind: output, shape index: {}]  }
   0x1   :  { %9 = vsyncpa [#allocation5], 0  ;;  %s194_s12 = smov [#allocation3]  }
   0x2   :  { %s27_s13 = sshll.u32 %s194_s12, 4  ;;  %s28_s13 = int_to_ptr.vmem [resolvable:$true] %s27_s13 }
   0x3   :  { %s158_s14 = scalar_lea.vmem %s28_s13, 128  ;;  %p163_p1 = scmp.lt.s32.totalorder %s28_s13, %s28_s13 }
   0x4   :  { %p159_p0 = scmp.ne.s32.totalorder %s28_s13, %s158_s14  ;;  %p164_p2 = scmp.lt.s32.totalorder %s158_s14, %s158_s14 }
   0x6   :  { %p165_p3 = por %p164_p2, %p163_p1 }
   0x8   :  { %p166_p4 = pnand %p165_p3, %p159_p0 }
   0xa   :  { %169 = shalt.err (!%p166_p4)
}
   0xb   :  { %30 = dma.hbm_to_vmem [thread:$0]  %s233_s1, 128, %s28_s13, [#allocation4]  }
   0xc   :  { %190 = dma.done.wait [#allocation4], 128  }
   0xd   :  { %191 = vsyncadd [#allocation4], 4294967168  ;;  %v71_v0 = vld [vmem:[%s232_s0] sm:$0xff]  ;;  %vm76_vm0 = vcmask 261120   ;;  %vm96_vm3 = vcmask 7168   ;;  %vm69_vm4 = vcmask 0  }
   0xe   :  { %v72_v1 = vld [vmem:[#allocation3] sm:$0xff]  ;;  %v195_v21 = vmov 0.0  }
   0xf   :  { %v73_v2 = vsub.f32 %v71_v0, %v72_v1  ;;  %v87_v12 = vld [vmem:[%s234_s2] sm:$0xff]  ;;  %70 = vst.msk [vmem:[#allocation2] sm:$0x1] %vm69_vm4, %v195_v21  ;;  %s196_s2 = smov [#allocation6]  }
  0x10   :  { %v88_v14 = vsub.f32 1.0, %v87_v12  ;;  %s122_s20 = sshll.u32 %s196_s2, 4  ;;  %s123_s20 = int_to_ptr.vmem [resolvable:$true] %s122_s20 }
  0x11   :  { %v74_v3 = vadd.f32 1e-06, %v73_v2  ;;  %s170_s21 = scalar_lea.vmem %s123_s20, 16  ;;  %s174_s22 = scalar_lea.vmem %s123_s20, 32 }
  0x12   :  { %p171_p5 = scmp.ne.s32.totalorder %s123_s20, %s170_s21  ;;  %p175_p6 = scmp.lt.s32.totalorder %s123_s20, %s123_s20 }
  0x13   :  { %v75_v4 = vmul.f32 %v74_v3, %v74_v3  ;;  %p176_p7 = scmp.lt.s32.totalorder %s174_s22, %s170_s21 }
  0x15   :  { %v77_v5 = vsel %vm76_vm0, %v75_v4, 0.0  ;;  %p177_p8 = por %p176_p7, %p175_p6 }
  0x16   :  { %78 = vadd.xlane.f32.xlu0 %v77_v5  ;;  %v95_v29 = vld [vmem:[#allocation2] sm:$0x1] }
  0x17   :  { %p178_p9 = pnand %p177_p8, %p171_p5 }
  0x9f   :  { %v79_v6 = vpop.xlane.xlu0 %78 }
  0xa0   :  { %148 = vrsqrt.f32 %v79_v6  ;;  %vm82_vm1 = vcmp.eq.f32.partialorder %v79_v6, inf  ;;  %v85_v9 = vand.u32 2147483648, %v79_v6  ;;  %vm84_vm2 = vcmp.eq.f32.partialorder %v79_v6, 0.0 }
  0xa1   :  { %v89_v17 = vmul.f32 %v88_v14, %v79_v6 }
  0xad   :  { %v149_v7 = vpop.eup %148 }
  0xae   :  { %v81_v8 = vmul.f32 %v149_v7, %v79_v6 }
  0xb0   :  { %v83_v10 = vsel %vm82_vm1, %v79_v6, %v81_v8 }
  0xb1   :  { %v86_v11 = vsel %vm84_vm2, %v85_v9, %v83_v10 }
  0xb2   :  { %v90_v13 = vsub.f32 2.0, %v86_v11 }
  0xb4   :  { %v91_v15 = vmax.f32 %v90_v13, 0.0 }
  0xb6   :  { %v92_v16 = vmul.f32 %v91_v15, %v91_v15 }
  0xb8   :  { %v93_v18 = vmul.f32 %v92_v16, %v87_v12 }
  0xba   :  { %v94_v19 = vadd.f32 %v93_v18, %v89_v17 }
  0xbc   :  { %v97_v20 = vsel %vm96_vm3, %v94_v19, 0.0 }
  0xbd   :  { %98 = vadd.xlane.f32.xlu0 %v97_v20 }
 0x146   :  { %v99_v22 = vpop.xlane.xlu0 %98 }
 0x147   :  { %v100_v23 = vrot.slane %v99_v22, 4 }
 0x149   :  { %v101_v24 = vadd.f32 %v100_v23, %v99_v22 }
 0x14b   :  { %v102_v25 = vrot.slane %v101_v24, 2 }
 0x14d   :  { %v103_v26 = vadd.f32 %v102_v25, %v101_v24 }
 0x14f   :  { %v104_v27 = vrot.slane %v103_v26, 1 }
 0x151   :  { %v105_v28 = vadd.f32 %v104_v27, %v103_v26 }
 0x153   :  { %143 = vpush %v105_v28 }
 0x184   :  { %s144_s0 = spop %143 }
 0x185   :  { %v107_v30 = vstv %s144_s0 }
 0x186   :  { %v108_v31 = vadd.f32 %v107_v30, %v95_v29 }
 0x188   :  { %110 = vst.msk [vmem:[#allocation2] sm:$0x1] %vm69_vm4, %v108_v31 }
 0x18f   :  { %v114_v32 = vld [vmem:[#allocation2] sm:$0x1] }
 0x190   :  { %115 = vst.msk [vmem:[#allocation6] sm:$0x1] %vm69_vm4, %v114_v32 }
 0x191   :  { %181 = shalt.err (!%p178_p9)
}
 0x192   :  { %125 = dma.vmem_to_hbm [thread:$0]  %s123_s20, 16, %s235_s3, [#allocation5]  }
 0x193   :  { %192 = dma.done.wait [#allocation5], 16  }
 0x194   :  { %193 = vsyncadd [#allocation5], 4294967280 }
 0x195   :  { %129 = vsyncpa [#allocation4], 1 }
 0x196   :  { %130 = vsyncpa [#allocation5], 1 }

</bundles_post_ra>
